<compile_context>
chip_gen: v7x
topology: tpu7x:2x2x1
jax: 0.10.0
libtpu: 0.0.40
codegen_flags: <defaults>
</compile_context>

<pallas_src>
import jax
import jax.numpy as jnp
from jax.experimental import pallas as pl
from jax.experimental.pallas import tpu as pltpu


def _round_up(v: int, m: int) -> int:
    return (v + m - 1) // m * m


def _make_kernel(b_pad: int, length: int, conv_meta, fc_meta, matmul_dtype):
    """conv_meta: list of (row_off, c_out, K, n_ctr_pad); fc_meta: (row_off, n_pad, n_ctr_pad)."""

    def kernel(x_ref, p_ref, out_ref):
        X = x_ref[...]                                   # (C_in0, L*Bp), float32
        L = length
        for (r0, c_out, K, n_ctr_pad) in conv_meta:
            L_out = L - K + 1
            # im2col: each tap is a vreg-aligned contiguous lane slice; taps are stacked
            # along sublanes together with a ones row (folded bias) and zero rows (pad to x8,
            # matching zero columns in the weight slab).
            taps = [X[:, k * b_pad:(k + L_out) * b_pad] for k in range(K)]
            taps.append(jnp.ones((1, L_out * b_pad), X.dtype))
            rows = sum(t.shape[0] for t in taps)
            if n_ctr_pad > rows:
                taps.append(jnp.zeros((n_ctr_pad - rows, L_out * b_pad), X.dtype))
            patches = jnp.concatenate(taps, axis=0).astype(matmul_dtype)   # (n_ctr_pad, L_out*Bp)
            W = p_ref[r0:r0 + c_out, 0:n_ctr_pad]        # augmented weight (bias col + zero pad)
            acc = jnp.dot(W, patches, preferred_element_type=jnp.float32)
            X = jnp.maximum(acc, 0.0)                    # (c_out, L_out*Bp), f32 bias+ReLU on VPU
            L = L_out

        # FC: restack (C_last, L_final*Bp) -> (L_final*C_last, Bp) by sublane-stacking the
        # vreg-aligned per-position lane slices; one matmul for the whole padded batch.
        r0, n_pad, n_ctr_pad = fc_meta
        cols = [X[:, l * b_pad:(l + 1) * b_pad] for l in range(L)]
        cols.append(jnp.ones((1, b_pad), X.dtype))       # folded FC bias
        rows = sum(c.shape[0] for c in cols)
        if n_ctr_pad > rows:
            cols.append(jnp.zeros((n_ctr_pad - rows, b_pad), X.dtype))
        ystack = jnp.concatenate(cols, axis=0).astype(matmul_dtype)        # (n_ctr_pad, Bp)
        Wfc = p_ref[r0:r0 + n_pad, 0:n_ctr_pad]
        logits = jnp.dot(Wfc, ystack, preferred_element_type=jnp.float32)  # (n_pad, Bp)
        out_ref[...] = jax.nn.sigmoid(logits)            # single unmasked lane-dense store

    return kernel


def cnn_classifier_forward(x, conv_params, wfc, bfc, *, matmul_dtype=jnp.float32):
    """Pallas forward pass.

    x: (B, C_in, L) float32.
    conv_params: list of (w, b) with w: (C_out, C_in, K), b: (C_out,).
    wfc: (num_classes, C_last*L_final), bfc: (num_classes,).
    matmul_dtype: dtype fed to the MXU only (recommend jnp.bfloat16 on v6e/v7x; keep f32
    when a tight tolerance is required).  Elementwise math / accumulation stay f32.
    """
    B, C_in, L = x.shape
    num_classes, fc_in = int(wfc.shape[0]), int(wfc.shape[1])
    c_last = int(conv_params[-1][0].shape[0])
    kernel_sizes = [int(w.shape[2]) for w, _ in conv_params]
    l_final = L - sum(kernel_sizes) + len(kernel_sizes)
    assert fc_in == c_last * l_final, (fc_in, c_last, l_final)

    b_pad = _round_up(max(B, 128), 128)          # lane-dense + vreg-aligned tap slices
    n_pad = _round_up(num_classes, 8)            # sublane-dense output rows

    # ---- input relayout (plain JAX glue): (B, C, L) -> (C, L*Bp), lane = l*Bp + b, f32 ----
    # Input stays f32; only the dot operands are cast in-kernel.
    # TODO(synk): at production batch, fuse this relayout into the upstream producer (or do
    # the interleave in-kernel) to avoid an extra HBM pass; negligible at this size.
    x_p = jnp.pad(x.astype(jnp.float32), ((0, b_pad - B), (0, 0), (0, 0)))
    x_il = jnp.transpose(x_p, (1, 2, 0)).reshape(C_in, L * b_pad)

    # ---- pack ALL parameters into one slab; biases folded as an extra weight column ----
    blocks, conv_meta = [], []
    r = 0
    for w, b in conv_params:
        c_out, c_in_i, k = (int(s) for s in w.shape)
        w_aug = jnp.concatenate(
            [jnp.transpose(w, (0, 2, 1)).reshape(c_out, k * c_in_i),  # col index = k*C_in + c
             b.reshape(c_out, 1)], axis=1)                             # bias column
        blocks.append(w_aug)
        conv_meta.append((r, c_out, k, _round_up(k * c_in_i + 1, 8)))
        r = _round_up(r + c_out, 8)

    # torch flatten order f = c*L_final + l  ->  reorder columns to l*C_last + c.
    wfc_re = (wfc.reshape(num_classes, c_last, l_final)
                 .transpose(0, 2, 1)
                 .reshape(num_classes, l_final * c_last))
    wfc_aug = jnp.concatenate([wfc_re, bfc.reshape(num_classes, 1)], axis=1)
    wfc_aug = jnp.pad(wfc_aug, ((0, n_pad - num_classes), (0, 0)))     # zero rows -> sigmoid(0)
    fc_ctr_pad = _round_up(l_final * c_last + 1, 8)
    blocks.append(wfc_aug)
    fc_meta = (r, n_pad, fc_ctr_pad)
    r = _round_up(r + n_pad, 8)

    slab_cols = _round_up(max([fc_ctr_pad] + [m[3] for m in conv_meta]), 128)
    slab = jnp.zeros((r, slab_cols), jnp.float32)
    offsets = [m[0] for m in conv_meta] + [fc_meta[0]]
    for off, blk in zip(offsets, blocks):
        slab = slab.at[off:off + blk.shape[0], :blk.shape[1]].set(blk.astype(jnp.float32))
    slab = slab.astype(matmul_dtype)

    kernel = _make_kernel(b_pad, L, conv_meta, fc_meta, matmul_dtype)

    out = pl.pallas_call(
        kernel,
        out_shape=jax.ShapeDtypeStruct((n_pad, b_pad), jnp.float32),
        in_specs=[pl.BlockSpec(memory_space=pltpu.MemorySpace.VMEM)] * 2,
        out_specs=pl.BlockSpec(memory_space=pltpu.MemorySpace.VMEM),
    )(x_il, slab)

    # Slice off batch/class padding; tiny (num_classes, B) transpose is layout plumbing only.
    return out[:num_classes, :B].T


def cnn_classifier_reference(x, conv_params, wfc, bfc):
    """Pure-JAX reference mirroring the PyTorch forward pass (highest precision)."""
    hp = jax.lax.Precision.HIGHEST
    for w, b in conv_params:
        k_sz = w.shape[2]
        l_out = x.shape[2] - k_sz + 1
        out = jnp.zeros((x.shape[0], w.shape[0], l_out), jnp.float32)
        for k in range(k_sz):
            out = out + jnp.einsum('oc,bcl->bol', w[:, :, k], x[:, :, k:k + l_out],
                                   precision=hp)
        x = jax.nn.relu(out + b[None, :, None])
    flat = x.reshape(x.shape[0], -1)
    logits = jnp.dot(flat, wfc.T, precision=hp) + bfc[None, :]
    return jax.nn.sigmoid(logits)


if __name__ == "__main__":
    # Small config consistent with the module:
    #   num_channels=4, window_size=16, layer_sizes=[8, 16], kernel_sizes=[3, 3], num_classes=5
    batch = 2
    num_channels = 4
    window_size = 16
    layer_sizes = [8, 16]
    kernel_sizes = [3, 3]
    num_classes = 5
    l_final = window_size - sum(kernel_sizes) + len(kernel_sizes)   # 12
    fc_in = layer_sizes[-1] * l_final                                # 192

    key = jax.random.PRNGKey(0)
    keys = jax.random.split(key, 2 * len(layer_sizes) + 3)

    x = jax.random.normal(keys[0], (batch, num_channels, window_size), jnp.float32)

    conv_params = []
    c_in = num_channels
    for i, (c_out, k_sz) in enumerate(zip(layer_sizes, kernel_sizes)):
        w = jax.random.normal(keys[1 + 2 * i], (c_out, c_in, k_sz), jnp.float32) * 0.1
        b = jax.random.normal(keys[2 + 2 * i], (c_out,), jnp.float32) * 0.1
        conv_params.append((w, b))
        c_in = c_out

    wfc = jax.random.normal(keys[-1], (num_classes, fc_in), jnp.float32) * 0.05
    bfc = jax.random.normal(keys[-2], (num_classes,), jnp.float32) * 0.05

    ref = cnn_classifier_reference(x, conv_params, wfc, bfc)

    # f32 MXU path (strict check).
    out_f32 = jax.block_until_ready(cnn_classifier_forward(x, conv_params, wfc, bfc))
    assert out_f32.shape == (batch, num_classes), out_f32.shape
    assert jnp.allclose(out_f32, ref, atol=1e-4, rtol=1e-4), (out_f32, ref)

    # bf16 MXU operands (recommended on v6e/v7x); elementwise/accumulation stay f32,
    # so only a relaxed tolerance is needed.
    out_bf16 = jax.block_until_ready(
        cnn_classifier_forward(x, conv_params, wfc, bfc, matmul_dtype=jnp.bfloat16))
    assert out_bf16.shape == (batch, num_classes), out_bf16.shape
    assert jnp.allclose(out_bf16, ref, atol=5e-2, rtol=5e-2), (out_bf16, ref)

    print("KERNEL_OK")
</pallas_src>

<mosaic_0001>
module attributes {stable_mosaic.version = 11 : i64} {
  func.func @kernel(%arg0: memref<4x2048xf32, #tpu.memory_space<vmem>>, %arg1: memref<32x256xf32, #tpu.memory_space<vmem>>, %arg2: memref<8x128xf32, #tpu.memory_space<vmem>>) attributes {dimension_semantics = [], scalar_prefetch = 0 : i64, scratch_operands = 0 : i64, tpu.core_type = #tpu.core_type<tc>} {
    %c0 = arith.constant 0 : index
    %c0_0 = arith.constant 0 : index
    %0 = vector.load %arg0[%c0, %c0_0] : memref<4x2048xf32, #tpu.memory_space<vmem>>, vector<4x2048xf32>
    %1 = vector.extract_strided_slice %0 {offsets = [0, 0], sizes = [4, 1792], strides = [1, 1]} : vector<4x2048xf32> to vector<4x1792xf32>
    %2 = vector.extract_strided_slice %0 {offsets = [0, 128], sizes = [4, 1792], strides = [1, 1]} : vector<4x2048xf32> to vector<4x1792xf32>
    %3 = vector.extract_strided_slice %0 {offsets = [0, 256], sizes = [4, 1792], strides = [1, 1]} : vector<4x2048xf32> to vector<4x1792xf32>
    %cst = arith.constant 1.000000e+00 : f32
    %4 = vector.broadcast %cst : f32 to vector<1x1792xf32>
    %cst_1 = arith.constant 0.000000e+00 : f32
    %5 = vector.broadcast %cst_1 : f32 to vector<3x1792xf32>
    %6 = tpu.concatenate %1, %2, %3, %4, %5 in 0 : vector<4x1792xf32>, vector<4x1792xf32>, vector<4x1792xf32>, vector<1x1792xf32>, vector<3x1792xf32> -> vector<16x1792xf32>
    %c0_2 = arith.constant 0 : index
    %c0_3 = arith.constant 0 : index
    %7 = vector.load %arg1[%c0_2, %c0_3] : memref<32x256xf32, #tpu.memory_space<vmem>>, vector<8x16xf32>
    %cst_4 = arith.constant dense<0.000000e+00> : vector<8x1792xf32>
    %8 = tpu.matmul %7, %6, %cst_4 {dimension_numbers = #tpu.dot_dimension_numbers<[1], [0], [0], [1], [0, 0, 1, 1], [], []>} : vector<8x16xf32>, vector<16x1792xf32>, vector<8x1792xf32> -> vector<8x1792xf32>
    %cst_5 = arith.constant 0.000000e+00 : f32
    %9 = vector.broadcast %cst_5 : f32 to vector<8x1792xf32>
    %10 = arith.maximumf %8, %9 : vector<8x1792xf32>
    %11 = vector.extract_strided_slice %10 {offsets = [0, 0], sizes = [8, 1536], strides = [1, 1]} : vector<8x1792xf32> to vector<8x1536xf32>
    %12 = vector.extract_strided_slice %10 {offsets = [0, 128], sizes = [8, 1536], strides = [1, 1]} : vector<8x1792xf32> to vector<8x1536xf32>
    %13 = vector.extract_strided_slice %10 {offsets = [0, 256], sizes = [8, 1536], strides = [1, 1]} : vector<8x1792xf32> to vector<8x1536xf32>
    %cst_6 = arith.constant 1.000000e+00 : f32
    %14 = vector.broadcast %cst_6 : f32 to vector<1x1536xf32>
    %cst_7 = arith.constant 0.000000e+00 : f32
    %15 = vector.broadcast %cst_7 : f32 to vector<7x1536xf32>
    %16 = tpu.concatenate %11, %12, %13, %14, %15 in 0 : vector<8x1536xf32>, vector<8x1536xf32>, vector<8x1536xf32>, vector<1x1536xf32>, vector<7x1536xf32> -> vector<32x1536xf32>
    %c8 = arith.constant 8 : index
    %c0_8 = arith.constant 0 : index
    %17 = vector.load %arg1[%c8, %c0_8] : memref<32x256xf32, #tpu.memory_space<vmem>>, vector<16x32xf32>
    %cst_9 = arith.constant dense<0.000000e+00> : vector<16x1536xf32>
    %18 = tpu.matmul %17, %16, %cst_9 {dimension_numbers = #tpu.dot_dimension_numbers<[1], [0], [0], [1], [0, 0, 1, 1], [], []>} : vector<16x32xf32>, vector<32x1536xf32>, vector<16x1536xf32> -> vector<16x1536xf32>
    %cst_10 = arith.constant 0.000000e+00 : f32
    %19 = vector.broadcast %cst_10 : f32 to vector<16x1536xf32>
    %20 = arith.maximumf %18, %19 : vector<16x1536xf32>
    %21 = vector.extract_strided_slice %20 {offsets = [0, 0], sizes = [16, 128], strides = [1, 1]} : vector<16x1536xf32> to vector<16x128xf32>
    %22 = vector.extract_strided_slice %20 {offsets = [0, 128], sizes = [16, 128], strides = [1, 1]} : vector<16x1536xf32> to vector<16x128xf32>
    %23 = vector.extract_strided_slice %20 {offsets = [0, 256], sizes = [16, 128], strides = [1, 1]} : vector<16x1536xf32> to vector<16x128xf32>
    %24 = vector.extract_strided_slice %20 {offsets = [0, 384], sizes = [16, 128], strides = [1, 1]} : vector<16x1536xf32> to vector<16x128xf32>
    %25 = vector.extract_strided_slice %20 {offsets = [0, 512], sizes = [16, 128], strides = [1, 1]} : vector<16x1536xf32> to vector<16x128xf32>
    %26 = vector.extract_strided_slice %20 {offsets = [0, 640], sizes = [16, 128], strides = [1, 1]} : vector<16x1536xf32> to vector<16x128xf32>
    %27 = vector.extract_strided_slice %20 {offsets = [0, 768], sizes = [16, 128], strides = [1, 1]} : vector<16x1536xf32> to vector<16x128xf32>
    %28 = vector.extract_strided_slice %20 {offsets = [0, 896], sizes = [16, 128], strides = [1, 1]} : vector<16x1536xf32> to vector<16x128xf32>
    %29 = vector.extract_strided_slice %20 {offsets = [0, 1024], sizes = [16, 128], strides = [1, 1]} : vector<16x1536xf32> to vector<16x128xf32>
    %30 = vector.extract_strided_slice %20 {offsets = [0, 1152], sizes = [16, 128], strides = [1, 1]} : vector<16x1536xf32> to vector<16x128xf32>
    %31 = vector.extract_strided_slice %20 {offsets = [0, 1280], sizes = [16, 128], strides = [1, 1]} : vector<16x1536xf32> to vector<16x128xf32>
    %32 = vector.extract_strided_slice %20 {offsets = [0, 1408], sizes = [16, 128], strides = [1, 1]} : vector<16x1536xf32> to vector<16x128xf32>
    %cst_11 = arith.constant 1.000000e+00 : f32
    %33 = vector.broadcast %cst_11 : f32 to vector<1x128xf32>
    %cst_12 = arith.constant 0.000000e+00 : f32
    %34 = vector.broadcast %cst_12 : f32 to vector<7x128xf32>
    %35 = tpu.concatenate %21, %22, %23, %24, %25, %26, %27, %28, %29, %30, %31, %32, %33, %34 in 0 : vector<16x128xf32>, vector<16x128xf32>, vector<16x128xf32>, vector<16x128xf32>, vector<16x128xf32>, vector<16x128xf32>, vector<16x128xf32>, vector<16x128xf32>, vector<16x128xf32>, vector<16x128xf32>, vector<16x128xf32>, vector<16x128xf32>, vector<1x128xf32>, vector<7x128xf32> -> vector<200x128xf32>
    %c24 = arith.constant 24 : index
    %c0_13 = arith.constant 0 : index
    %36 = vector.load %arg1[%c24, %c0_13] : memref<32x256xf32, #tpu.memory_space<vmem>>, vector<8x200xf32>
    %cst_14 = arith.constant dense<0.000000e+00> : vector<8x128xf32>
    %37 = tpu.matmul %36, %35, %cst_14 {dimension_numbers = #tpu.dot_dimension_numbers<[1], [0], [0], [1], [0, 0, 1, 1], [], []>} : vector<8x200xf32>, vector<200x128xf32>, vector<8x128xf32> -> vector<8x128xf32>
    %38 = arith.negf %37 : vector<8x128xf32>
    %39 = math.exp %38 : vector<8x128xf32>
    %cst_15 = arith.constant 1.000000e+00 : f32
    %40 = vector.broadcast %cst_15 : f32 to vector<8x128xf32>
    %41 = arith.addf %40, %39 : vector<8x128xf32>
    %42 = arith.divf %40, %41 : vector<8x128xf32>
    %c0_16 = arith.constant 0 : index
    %c0_17 = arith.constant 0 : index
    %43 = vector.load %arg2[%c0_16, %c0_17] : memref<8x128xf32, #tpu.memory_space<vmem>>, vector<8x128xf32>
    tpu.vector_store %arg2[%c0_16, %c0_17], %42 {strides = array<i32>} : memref<8x128xf32, #tpu.memory_space<vmem>>, vector<8x128xf32>,
    return
  }
}

</mosaic_0001>

<bundles_post_ra>
// kernel: tpu_custom_call.1
= control target key start
LH: loop header
LB: loop body
LE: loop exit
PB: predicated region body
PF: predicated region fallthrough
CT: control target
= control target key end

     0   :  { %7 = vsyncpa [#allocation3], 0  ;;  %s1761_s0 = inlined_call_operand.hbm [shape: f32[4,2048], index: 0, kind: input, shape index: {}]   ;;  %s1762_s1 = inlined_call_operand.hbm [shape: f32[32,256], index: 1, kind: input, shape index: {}]   ;;  %s1763_s2 = inlined_call_operand.hbm [shape: f32[8,128], index: 2, kind: output, shape index: {}]  }
   0x1   :  { %8 = vsyncpa [#allocation6], 0 }
   0x2   :  { %9 = vsyncpa [#allocation4], 0  ;;  %s1519_s9 = smov [#allocation2]   ;;  %s1520_s11 = smov [#allocation5]  }
   0x3   :  { %s16_s10 = sshll.u32 %s1519_s9, 4  ;;  %s25_s12 = sshll.u32 %s1520_s11, 4  ;;  %s17_s10 = int_to_ptr.vmem [resolvable:$true] %s16_s10  ;;  %s1543_s12 = int_to_ptr.vmem [resolvable:$true] %s25_s12 }
   0x4   :  { %s1447_s15 = scalar_lea.hbm %s1761_s0, 1024 }
   0x5   :  { %p1448_p0 = scmp.ne.s32.totalorder %s1761_s0, %s1447_s15  ;;  %p1451_p1 = scmp.lt.u32.totalorder %s1447_s15, %s1761_s0 }
   0x7   :  { %p1453_p2 = pnand %p1451_p1, %p1448_p0 }
   0x9   :  { %1456 = shalt.err (!%p1453_p2)
}
   0xa   :  { %s1457_s20 = scalar_lea.vmem %s17_s10, 1024  ;;  %p1462_p4 = scmp.lt.s32.totalorder %s17_s10, %s17_s10 }
   0xb   :  { %p1458_p3 = scmp.ne.s32.totalorder %s17_s10, %s1457_s20  ;;  %p1463_p5 = scmp.lt.s32.totalorder %s1457_s20, %s1457_s20 }
   0xd   :  { %p1464_p6 = por %p1463_p5, %p1462_p4 }
   0xf   :  { %p1465_p7 = pnand %p1464_p6, %p1458_p3 }
  0x11   :  { %1468 = shalt.err (!%p1465_p7)
}
  0x12   :  { %19 = dma.hbm_to_vmem [thread:$0]  %s1761_s0, 1024, %s17_s10, [#allocation3]  }
  0x13   :  { %s1469_s25 = scalar_lea.hbm %s1762_s1, 1024 }
  0x14   :  { %p1470_p8 = scmp.ne.s32.totalorder %s1762_s1, %s1469_s25  ;;  %p1473_p9 = scmp.lt.u32.totalorder %s1469_s25, %s1762_s1 }
  0x16   :  { %p1475_p10 = pnand %p1473_p9, %p1470_p8 }
  0x18   :  { %1478 = shalt.err (!%p1475_p10)
}
  0x19   :  { %s1479_s30 = scalar_lea.vmem %s1543_s12, 1024  ;;  %p1484_p12 = scmp.lt.s32.totalorder %s1543_s12, %s1543_s12 }
  0x1a   :  { %p1480_p11 = scmp.ne.s32.totalorder %s1543_s12, %s1479_s30  ;;  %p1485_p13 = scmp.lt.s32.totalorder %s1479_s30, %s1479_s30 }
  0x1c   :  { %p1486_p0 = por %p1485_p13, %p1484_p12 }
  0x1e   :  { %p1487_p1 = pnand %p1486_p0, %p1480_p11 }
  0x20   :  { %1490 = shalt.err (!%p1487_p1)
}
  0x21   :  { %s1521_s0 = smov 256   ;;  %s1522_s3 = smov 16  }
  0x22   :  { %31 = dma.hbm_to_vmem [thread:$0]  %s1762_s1, 1024, %s1543_s12, [#allocation6], %s1521_s0, %s1521_s0, %s1522_s3  }
  0x23   :  { %1513 = dma.done.wait [#allocation3], 1024  }
  0x24   :  { %1514 = vsyncadd [#allocation3], 4294966272 }
  0x25   :  { %1515 = dma.done.wait [#allocation6], 1024  }
  0x26   :  { %1516 = vsyncadd [#allocation6], 4294966272  ;;  %v1523_v0 = vmov 0.0   ;;  %vm84_vm0 = vcmask 1043456   ;;  %v38_v1 = vld [vmem:[#allocation2] sm:$0xff]  ;;  %v39_v2 = vld [vmem:[#allocation2 + $0x8] sm:$0xff] }
  0x27   :  { %190 = vmatprep.mubr.f32.mxu0 %v1523_v0  ;;  %403 = vmatprep.mubr.f32.mxu1 %v1523_v0  ;;  %vm106_vm1 = vcmask 1044480   ;;  %v53_v3 = vcombine.high %v38_v1, %v38_v1  ;;  %v54_v4 = vcombine.high %v39_v2, %v39_v2  ;;  %v68_v5 = vcombine.low %v39_v2, %v39_v2  ;;  %v1577_v7 = vld [vmem:[#allocation2 + $0x10] sm:$0xff]  ;;  %v41_v8 = vld [vmem:[#allocation2 + $0x18] sm:$0xff]  ;;  %v1583_v12 = vld [vmem:[#allocation2 + $0x20] sm:$0xff]  ;;  %s1527_s1 = smov [#allocation7]  }
  0x28   :  { %v92_v6 = vsel %vm84_vm0, %v39_v2, 1.0  ;;  %v55_v10 = vcombine.high %v1577_v7, %v1577_v7  ;;  %v69_v11 = vcombine.low %v1577_v7, %v1577_v7  ;;  %vm1524_vm2 = vmmov 1   ;;  %v43_v22 = vld [vmem:[#allocation2 + $0x28] sm:$0xff]  ;;  %v44_v26 = vld [vmem:[#allocation2 + $0x30] sm:$0xff]  ;;  %v121_v30 = vld [vmem:[#allocation5] sm:$0xff]  ;;  %s1223_s6 = sshll.u32 %s1527_s1, 4  ;;  %s1224_s6 = int_to_ptr.vmem [resolvable:$true] %s1223_s6 }
  0x29   :  { %v1284_v9 = vpack.c.bf16 %v92_v6, %v38_v1  ;;  %v85_v13 = vsel %vm84_vm0, %v53_v3, %v68_v5  ;;  %v93_v14 = vsel %vm84_vm0, %v54_v4, 1.0  ;;  %vm1588_vm3 = vmpackc.low %vm106_vm1, %vm1524_vm2  ;;  %v94_v16 = vsel %vm84_vm0, %v1577_v7, 1.0  ;;  %v45_v35 = vld [vmem:[#allocation2 + $0x38] sm:$0xff]  ;;  %s1491_s7 = scalar_lea.vmem %s1224_s6, 128  ;;  %p1496_p3 = scmp.lt.s32.totalorder %s1224_s6, %s1224_s6 }
  0x2a   :  { %v56_v17 = vcombine.high %v41_v8, %v41_v8  ;;  %v1281_v18 = vpack.c.bf16 %v93_v14, %v85_v13  ;;  %v86_v19 = vsel %vm84_vm0, %v54_v4, %v69_v11  ;;  %v95_v20 = vsel %vm84_vm0, %v55_v10, 1.0  ;;  %p1492_p2 = scmp.ne.s32.totalorder %s1224_s6, %s1491_s7  ;;  %p1497_p4 = scmp.lt.s32.totalorder %s1491_s7, %s1491_s7 }
  0x2b   :  { %v70_v21 = vcombine.low %v41_v8, %v41_v8  ;;  %v1287_v23 = vpack.c.bf16 %v95_v20, %v86_v19  ;;  %v57_v25 = vcombine.high %v1583_v12, %v1583_v12  ;;  %vm122_vm4 = vcmask 130048  }
  0x2c   :  { %v97_v24 = vsel %vm84_vm0, %v56_v17, 1.0  ;;  %1283 = vmatprep.subr.msk.bf16.mxu0 %vm1588_vm3, %v1281_v18  ;;  %v71_v28 = vcombine.low %v1583_v12, %v1583_v12  ;;  %v98_v29 = vsel %vm84_vm0, %v1583_v12, 1.0  ;;  %v1290_v31 = vpack.c.bf16 %v94_v16, %v39_v2  ;;  %p1498_p5 = por %p1497_p4, %p1496_p3 }
  0x2d   :  { %v87_v27 = vsel %vm84_vm0, %v55_v10, %v70_v21  ;;  %1286 = vmatpush1.bf16.msk.msra.mxu0 %vm1588_vm3, %v1284_v9  ;;  %v96_v32 = vsel %vm84_vm0, %v41_v8, 1.0  ;;  %v99_v33 = vsel %vm84_vm0, %v57_v25, 1.0  ;;  %v58_v34 = vcombine.high %v43_v22, %v43_v22 }
  0x2e   :  { %1289 = vmatprep.subr.msk.bf16.mxu0 %vm1588_vm3, %v1287_v23  ;;  %v1293_v36 = vpack.c.bf16 %v97_v24, %v87_v27  ;;  %v88_v37 = vsel %vm84_vm0, %v56_v17, %v71_v28  ;;  %v72_v38 = vcombine.low %v43_v22, %v43_v22  ;;  %v59_v39 = vcombine.high %v44_v26, %v44_v26  ;;  %p1499_p6 = pnand %p1498_p5, %p1492_p2 }
  0x2f   :  { %v1299_v40 = vpack.c.bf16 %v99_v33, %v88_v37  ;;  %v1302_v41 = vpack.c.bf16 %v98_v29, %v41_v8  ;;  %v101_v42 = vsel %vm84_vm0, %v58_v34, 1.0  ;;  %v73_v43 = vcombine.low %v44_v26, %v44_v26 }
  0x30   :  { %1235 = vmatmul.mubr.msk.f32.vlgmr.msra.gmra.mrb[0].mxu0 %vm122_vm4, %v121_v30  ;;  %v89_v44 = vsel %vm84_vm0, %v57_v25, %v72_v38  ;;  %v103_v45 = vsel %vm84_vm0, %v59_v39, 1.0  ;;  %v102_v46 = vsel %vm84_vm0, %v44_v26, 1.0  ;;  %v74_v47 = vcombine.low %v45_v35, %v45_v35 }
  0x31   :  { %1292 = vmatpush1.bf16.msk.msra.mxu0 %vm1588_vm3, %v1290_v31  ;;  %261 = vmatprep.mubr.f32.mxu0 %v1523_v0  ;;  %v1296_v48 = vpack.c.bf16 %v96_v32, %v1577_v7  ;;  %v90_v49 = vsel %vm84_vm0, %v58_v34, %v73_v43  ;;  %v1305_v50 = vpack.c.bf16 %v101_v42, %v89_v44  ;;  %v100_v51 = vsel %vm84_vm0, %v43_v22, 1.0  ;;  %v639_v32 = vld [vmem:[#allocation5 + $0x10] sm:$0xff]  ;;  %v640_v43 = vld [vmem:[#allocation5 + $0x20] sm:$0xff] }
  0x32   :  { %1295 = vmatprep.subr.msk.bf16.mxu0 %vm1588_vm3, %v1293_v36  ;;  %1301 = vmatprep.subr.msk.bf16.mxu1 %vm1588_vm3, %v1299_v40  ;;  %v1311_v52 = vpack.c.bf16 %v103_v45, %v90_v49  ;;  %v82_v53 = vcombine.high %v45_v35, %v45_v35  ;;  %v1314_v54 = vpack.c.bf16 %v102_v46, %v43_v22  ;;  %v104_v59 = vsel %vm84_vm0, %v45_v35, 1.0 }
  0x33   :  { %1304 = vmatpush1.bf16.msk.msra.mxu1 %vm1588_vm3, %v1302_v41  ;;  %v91_v55 = vsel %vm84_vm0, %v59_v39, %v74_v47  ;;  %v1308_v57 = vpack.c.bf16 %v100_v51, %v1583_v12  ;;  %v1320_v60 = vpack.c.bf16 %v104_v59, %v44_v26  ;;  %vm637_vm5 = vcmask 1040384  }
  0x34   :  { %1238 = vmatmul.mubr.msk.f32.vlgmr.msra.gmra.mrb[2].mxu0 %vm122_vm4, %v121_v30  ;;  %1313 = vmatprep.subr.msk.bf16.mxu1 %vm1588_vm3, %v1311_v52  ;;  %v105_v56 = vsel %vm84_vm0, %v82_v53, 1.0  ;;  %v1525_v10 = vmov 1.0   ;;  %vm1663_vm6 = vmpackc.low %vm637_vm5, %vm1524_vm2  ;;  %vm641_vm7 = vcmask 261120   ;;  %vm1136_vm8 = vcmask 588800  }
  0x35   :  { %1298 = vmatpush1.bf16.msk.msra.mxu0 %vm1588_vm3, %v1296_v48  ;;  %332 = vmatprep.mubr.f32.mxu0 %v1523_v0  ;;  %v1317_v58 = vpack.c.bf16 %v105_v56, %v91_v55  ;;  %v1135_v55 = vld [vmem:[#allocation5 + $0x38] sm:$0xff] }
  0x36   :  { %1244 = vmatmul.mubr.msk.f32.vlgmr.msra.gmra.mrb[0].mxu1 %vm122_vm4, %v121_v30  ;;  %1307 = vmatprep.subr.msk.bf16.mxu0 %vm1588_vm3, %v1305_v50 }
  0x37   :  { %1316 = vmatpush1.bf16.msk.msra.mxu1 %vm1588_vm3, %v1314_v54  ;;  %545 = vmatprep.mubr.f32.mxu1 %v1523_v0  ;;  %v1526_v54 = vmov 0.0|0.0  }
  0x38   :  { %1241 = vmatmul.mubr.msk.f32.vlgmr.msra.gmra.mrb[4].mxu0 %vm122_vm4, %v121_v30 }
  0x39   :  { %1310 = vmatpush1.bf16.msk.msra.mxu0 %vm1588_vm3, %v1308_v57  ;;  %474 = vmatprep.mubr.f32.mxu0 %v1523_v0 }
  0x3a   :  { %1250 = vmatmul.mubr.msk.f32.vlgmr.msra.gmra.mrb[2].mxu1 %vm122_vm4, %v121_v30  ;;  %1319 = vmatprep.subr.msk.bf16.mxu0 %vm1588_vm3, %v1317_v58 }
  0x3b   :  { %1020 = vmatprep.mubr.f32.mxu1 %v1523_v0 }
  0x3c   :  { %1247 = vmatmul.mubr.msk.f32.vlgmr.msra.gmra.mrb[6].mxu0 %vm122_vm4, %v121_v30 }
  0x3d   :  { %1322 = vmatpush1.bf16.msk.msra.mxu0 %vm1588_vm3, %v1320_v60  ;;  %616 = vmatprep.mubr.f32.mxu0 %v1523_v0 }
  0x40   :  { %1253 = vmatmul.mubr.msk.f32.vlgmr.msra.gmra.mrb[8].mxu0 %vm122_vm4, %v121_v30 }
  0x41   :  { %712 = vmatprep.mubr.f32.mxu0 %v1523_v0 }
 0x103   :  { %v192_v61 = vpop.f32.mrb[0].mxu0 }
 0x104   :  { %v623_v62 = vmax.f32 %v192_v61, 0.0  ;;  %v194_v63 = vpop.f32.mrb[1].mxu0 }
 0x105   :  { %v624_v1 = vmax.f32 %v194_v63, 0.0 }
 0x107   :  { %v1325_v2 = vpack.c.bf16 %v624_v1, %v623_v62  ;;  %v263_v3 = vpop.f32.mrb[2].mxu0 }
 0x108   :  { %v625_v4 = vmax.f32 %v263_v3, 0.0  ;;  %v265_v5 = vpop.f32.mrb[3].mxu0 }
 0x109   :  { %v626_v6 = vmax.f32 %v265_v5, 0.0  ;;  %v405_v7 = vpop.f32.mrb[0].mxu1 }
 0x10a   :  { %v1323_v8 = vpack.c.bf16 %v625_v4, %v624_v1  ;;  %v407_v9 = vpop.f32.mrb[1].mxu1  ;;  %v1667_v15 = vmax.f32 %v405_v7, 0.0  ;;  %v1330_v22 = vpack.c.bf16 %v1525_v10, %v625_v4 }
 0x10b   :  { %v1327_v11 = vpack.c.bf16 %v1525_v10, %v626_v6  ;;  %v1335_v12 = vpack.c.bf16 %v626_v6, %v625_v4  ;;  %v334_v13 = vpop.f32.mrb[4].mxu0  ;;  %v1669_v16 = vmax.f32 %v407_v9, 0.0 }
 0x10c   :  { %v627_v17 = vmax.f32 %v334_v13, 0.0  ;;  %1324 = vmatprep.subr.bf16.mxu0 %v1323_v8  ;;  %v336_v18 = vpop.f32.mrb[5].mxu0  ;;  %v1350_v48 = vpack.c.bf16 %v1525_v10, %v1667_v15 }
 0x10d   :  { %1326 = vmatpush1.bf16.msra.mxu0 %v1325_v2  ;;  %v628_v19 = vmax.f32 %v336_v18, 0.0  ;;  %v1355_v20 = vpack.c.bf16 %v1669_v16, %v1667_v15  ;;  %v547_v21 = vpop.f32.mrb[2].mxu1  ;;  %v1347_v47 = vpack.c.bf16 %v1525_v10, %v1669_v16 }
 0x10e   :  { %1329 = vmatprep.subr.msk.bf16.mxu0 %vm1663_vm6, %v1327_v11  ;;  %v1333_v23 = vpack.c.bf16 %v627_v17, %v626_v6  ;;  %v549_v24 = vpop.f32.mrb[3].mxu1  ;;  %v633_v28 = vmax.f32 %v547_v21, 0.0  ;;  %v1340_v45 = vpack.c.bf16 %v1525_v10, %v627_v17 }
 0x10f   :  { %v1345_v25 = vpack.c.bf16 %v628_v19, %v627_v17  ;;  %v476_v26 = vpop.f32.mrb[6].mxu0  ;;  %v1343_v27 = vpack.c.bf16 %v1667_v15, %v628_v19  ;;  %v634_v29 = vmax.f32 %v549_v24, 0.0  ;;  %v1337_v39 = vpack.c.bf16 %v1525_v10, %v628_v19 }
 0x110   :  { %v631_v30 = vmax.f32 %v476_v26, 0.0  ;;  %v478_v31 = vpop.f32.mrb[7].mxu0  ;;  %v1370_v46 = vpack.c.bf16 %v1525_v10, %v633_v28 }
 0x111   :  { %1332 = vmatpush1.bf16.msk.msra.mxu0 %vm1663_vm6, %v1330_v22  ;;  %v632_v33 = vmax.f32 %v478_v31, 0.0  ;;  %v1375_v34 = vpack.c.bf16 %v634_v29, %v633_v28  ;;  %v1367_v40 = vpack.c.bf16 %v1525_v10, %v634_v29 }
 0x112   :  { %1334 = vmatprep.subr.bf16.mxu0 %v1333_v23  ;;  %v1353_v35 = vpack.c.bf16 %v631_v30, %v1669_v16  ;;  %v1360_v51 = vpack.c.bf16 %v1525_v10, %v631_v30 }
 0x113   :  { %v1365_v36 = vpack.c.bf16 %v632_v33, %v631_v30  ;;  %v1363_v37 = vpack.c.bf16 %v633_v28, %v632_v33  ;;  %v618_v38 = vpop.f32.mrb[8].mxu0  ;;  %v1357_v49 = vpack.c.bf16 %v1525_v10, %v632_v33 }
 0x114   :  { %1256 = vmatmul.mubr.msk.f32.vlgmr.msra.gmra.mrb[10].mxu0 %vm641_vm7, %v639_v32  ;;  %v635_v41 = vmax.f32 %v618_v38, 0.0  ;;  %v620_v42 = vpop.f32.mrb[9].mxu0 }
 0x115   :  { %1336 = vmatpush1.bf16.msra.mxu0 %v1335_v12  ;;  %718 = vmatprep.mubr.f32.mxu0 %v1523_v0  ;;  %v636_v50 = vmax.f32 %v620_v42, 0.0 }
 0x116   :  { %1339 = vmatprep.subr.msk.bf16.mxu0 %vm1663_vm6, %v1337_v39  ;;  %1364 = vmatprep.subr.bf16.mxu1 %v1363_v37  ;;  %v1373_v44 = vpack.c.bf16 %v635_v41, %v634_v29  ;;  %v1380_v53 = vpack.c.bf16 %v1525_v10, %v635_v41 }
 0x117   :  { %1366 = vmatpush1.bf16.msra.mxu1 %v1365_v36  ;;  %v1377_v52 = vpack.c.bf16 %v1525_v10, %v636_v50 }
 0x118   :  { %1257 = vmatmul.mubr.msk.f32.gmra.mrb[12].mxu0 %vm641_vm7, %v640_v43  ;;  %1369 = vmatprep.subr.msk.bf16.mxu1 %vm1663_vm6, %v1367_v40 }
 0x119   :  { %1342 = vmatpush1.bf16.msk.msra.mxu0 %vm1663_vm6, %v1340_v45  ;;  %789 = vmatprep.mubr.f32.mxu0 %v1523_v0 }
 0x11a   :  { %1344 = vmatprep.subr.bf16.mxu0 %v1343_v27 }
 0x11b   :  { %1372 = vmatpush1.bf16.msk.msra.mxu1 %vm1663_vm6, %v1370_v46 }
 0x11c   :  { %1260 = vmatmul.mubr.msk.f32.vlgmr.msra.gmra.mrb[14].mxu0 %vm641_vm7, %v639_v32  ;;  %1383 = vmatprep.subr.bf16.mxu1 %v1526_v54 }
 0x11d   :  { %1346 = vmatpush1.bf16.msra.mxu0 %v1345_v25  ;;  %795 = vmatprep.mubr.f32.mxu0 %v1523_v0 }
 0x11e   :  { %1349 = vmatprep.subr.msk.bf16.mxu0 %vm1663_vm6, %v1347_v47  ;;  %1272 = vmatmul.mubr.msk.f32.vlgmr.msra.gmra.mrb[4].mxu1 %vm641_vm7, %v639_v32 }
 0x11f   :  { %1026 = vmatprep.mubr.f32.mxu1 %v1523_v0 }
 0x120   :  { %1261 = vmatmul.mubr.msk.f32.gmra.mrb[16].mxu0 %vm641_vm7, %v640_v43 }
 0x121   :  { %1352 = vmatpush1.bf16.msk.msra.mxu0 %vm1663_vm6, %v1350_v48  ;;  %866 = vmatprep.mubr.f32.mxu0 %v1523_v0 }
 0x122   :  { %1354 = vmatprep.subr.bf16.mxu0 %v1353_v35  ;;  %1273 = vmatmul.mubr.msk.f32.gmra.mrb[6].mxu1 %vm641_vm7, %v640_v43 }
 0x123   :  { %1279 = vmatprep.mubr.msk.f32.mxu1 %vm1136_vm8, %v1135_v55  ;;  %v1134_v55 = vld [vmem:[#allocation5 + $0x30] sm:$0xff] }
 0x124   :  { %1264 = vmatmul.mubr.msk.f32.vlgmr.msra.gmra.mrb[18].mxu0 %vm641_vm7, %v639_v32 }
 0x125   :  { %1356 = vmatpush1.bf16.msra.mxu0 %v1355_v20  ;;  %872 = vmatprep.mubr.f32.mxu0 %v1523_v0 }
 0x126   :  { %1359 = vmatprep.subr.msk.bf16.mxu0 %vm1663_vm6, %v1357_v49 }
 0x128   :  { %1265 = vmatmul.mubr.msk.f32.gmra.mrb[20].mxu0 %vm641_vm7, %v640_v43 }
 0x129   :  { %1362 = vmatpush1.bf16.msk.msra.mxu0 %vm1663_vm6, %v1360_v51  ;;  %943 = vmatprep.mubr.f32.mxu0 %v1523_v0 }
 0x12a   :  { %1374 = vmatprep.subr.bf16.mxu0 %v1373_v44 }
 0x12c   :  { %1268 = vmatmul.mubr.msk.f32.vlgmr.msra.gmra.mrb[22].mxu0 %vm641_vm7, %v639_v32 }
 0x12d   :  { %1376 = vmatpush1.bf16.msra.mxu0 %v1375_v34  ;;  %949 = vmatprep.mubr.f32.mxu0 %v1523_v0 }
 0x12e   :  { %1379 = vmatprep.subr.msk.bf16.mxu0 %vm1663_vm6, %v1377_v52 }
 0x130   :  { %1269 = vmatmul.mubr.msk.f32.gmra.mrb[24].mxu0 %vm641_vm7, %v640_v43 }
 0x131   :  { %1382 = vmatpush1.bf16.msk.msra.mxu0 %vm1663_vm6, %v1380_v53  ;;  %1097 = vmatprep.mubr.f32.mxu0 %v1523_v0 }
 0x134   :  { %1276 = vmatmul.mubr.msk.f32.vlgmr.msra.gmra.mrb[26].mxu0 %vm641_vm7, %v639_v32 }
 0x135   :  { %1103 = vmatprep.mubr.f32.mxu0 %v1523_v0 }
 0x138   :  { %1277 = vmatmul.mubr.msk.f32.gmra.mrb[28].mxu0 %vm641_vm7, %v640_v43 }
 0x1e7   :  { %v714_v56 = vpop.f32.mrb[10].mxu0 }
 0x1e8   :  { %v716_v57 = vpop.f32.mrb[11].mxu0  ;;  %v1110_v59 = vmax.f32 %v714_v56, 0.0 }
 0x1e9   :  { %v1111_v62 = vmax.f32 %v716_v57, 0.0 }
 0x1eb   :  { %v720_v58 = vpop.f32.mrb[12].mxu0 }
 0x1ec   :  { %v1122_v60 = vmax.f32 %v720_v58, 0.0  ;;  %v722_v61 = vpop.f32.mrb[13].mxu0 }
 0x1ed   :  { %v1123_v63 = vmax.f32 %v722_v61, 0.0 }
 0x1ee   :  { %v1384_v1 = vpack.c.bf16 %v1122_v60, %v1110_v59 }
 0x1ef   :  { %v1387_v2 = vpack.c.bf16 %v1123_v63, %v1111_v62  ;;  %v791_v3 = vpop.f32.mrb[14].mxu0 }
 0x1f0   :  { %v793_v4 = vpop.f32.mrb[15].mxu0  ;;  %1385 = vmatpush1.bf16.msra.mxu1 %v1384_v1  ;;  %v1112_v8 = vmax.f32 %v791_v3, 0.0 }
 0x1f1   :  { %1386 = vmatprep.subr.bf16.mxu1 %v1526_v54  ;;  %v1022_v5 = vpop.f32.mrb[4].mxu1  ;;  %v1113_v13 = vmax.f32 %v793_v4, 0.0 }
 0x1f2   :  { %v1024_v6 = vpop.f32.mrb[5].mxu1  ;;  %v1118_v12 = vmax.f32 %v1022_v5, 0.0 }
 0x1f3   :  { %v797_v7 = vpop.f32.mrb[16].mxu0  ;;  %v1119_v15 = vmax.f32 %v1024_v6, 0.0 }
 0x1f4   :  { %v1124_v9 = vmax.f32 %v797_v7, 0.0  ;;  %v799_v11 = vpop.f32.mrb[17].mxu0  ;;  %1388 = vmatpush1.bf16.msra.mxu1 %v1387_v2 }
 0x1f5   :  { %v1125_v14 = vmax.f32 %v799_v11, 0.0  ;;  %1389 = vmatprep.subr.bf16.mxu1 %v1526_v54  ;;  %v1028_v16 = vpop.f32.mrb[6].mxu1 }
 0x1f6   :  { %v1390_v17 = vpack.c.bf16 %v1124_v9, %v1112_v8  ;;  %v1130_v18 = vmax.f32 %v1028_v16, 0.0  ;;  %v1030_v19 = vpop.f32.mrb[7].mxu1 }
 0x1f7   :  { %v1393_v20 = vpack.c.bf16 %v1125_v14, %v1113_v13  ;;  %v868_v21 = vpop.f32.mrb[18].mxu0  ;;  %v1131_v22 = vmax.f32 %v1030_v19, 0.0 }
 0x1f8   :  { %v870_v23 = vpop.f32.mrb[19].mxu0  ;;  %1391 = vmatpush1.bf16.msra.mxu1 %v1390_v17  ;;  %v1408_v24 = vpack.c.bf16 %v1130_v18, %v1118_v12  ;;  %v1114_v27 = vmax.f32 %v868_v21, 0.0 }
 0x1f9   :  { %1392 = vmatprep.subr.bf16.mxu1 %v1526_v54  ;;  %v1411_v25 = vpack.c.bf16 %v1131_v22, %v1119_v15  ;;  %v1115_v30 = vmax.f32 %v870_v23, 0.0 }
 0x1fb   :  { %v874_v26 = vpop.f32.mrb[20].mxu0 }
 0x1fc   :  { %v1126_v28 = vmax.f32 %v874_v26, 0.0  ;;  %v876_v29 = vpop.f32.mrb[21].mxu0  ;;  %1394 = vmatpush1.bf16.msra.mxu1 %v1393_v20 }
 0x1fd   :  { %v1127_v31 = vmax.f32 %v876_v29, 0.0  ;;  %1395 = vmatprep.subr.bf16.mxu1 %v1526_v54 }
 0x1fe   :  { %v1396_v32 = vpack.c.bf16 %v1126_v28, %v1114_v27 }
 0x1ff   :  { %v1399_v33 = vpack.c.bf16 %v1127_v31, %v1115_v30  ;;  %v945_v34 = vpop.f32.mrb[22].mxu0 }
 0x200   :  { %v947_v35 = vpop.f32.mrb[23].mxu0  ;;  %1397 = vmatpush1.bf16.msra.mxu1 %v1396_v32  ;;  %v1116_v37 = vmax.f32 %v945_v34, 0.0 }
 0x201   :  { %1398 = vmatprep.subr.bf16.mxu1 %v1526_v54  ;;  %v1117_v40 = vmax.f32 %v947_v35, 0.0 }
 0x203   :  { %v951_v36 = vpop.f32.mrb[24].mxu0 }
 0x204   :  { %v1128_v38 = vmax.f32 %v951_v36, 0.0  ;;  %v953_v39 = vpop.f32.mrb[25].mxu0  ;;  %1400 = vmatpush1.bf16.msra.mxu1 %v1399_v33 }
 0x205   :  { %v1129_v41 = vmax.f32 %v953_v39, 0.0  ;;  %1401 = vmatprep.subr.bf16.mxu1 %v1526_v54 }
 0x206   :  { %v1402_v42 = vpack.c.bf16 %v1128_v38, %v1116_v37 }
 0x207   :  { %v1405_v43 = vpack.c.bf16 %v1129_v41, %v1117_v40  ;;  %v1099_v44 = vpop.f32.mrb[26].mxu0 }
 0x208   :  { %1403 = vmatpush1.bf16.msra.mxu1 %v1402_v42  ;;  %v1101_v45 = vpop.f32.mrb[27].mxu0  ;;  %v1120_v46 = vmax.f32 %v1099_v44, 0.0 }
 0x209   :  { %1404 = vmatprep.subr.bf16.mxu1 %v1526_v54  ;;  %v1121_v47 = vmax.f32 %v1101_v45, 0.0 }
 0x20b   :  { %v1105_v48 = vpop.f32.mrb[28].mxu0 }
 0x20c   :  { %1406 = vmatpush1.bf16.msra.mxu1 %v1405_v43  ;;  %v1132_v49 = vmax.f32 %v1105_v48, 0.0  ;;  %v1107_v50 = vpop.f32.mrb[29].mxu0 }
 0x20d   :  { %1407 = vmatprep.subr.bf16.mxu1 %v1526_v54  ;;  %v1133_v51 = vmax.f32 %v1107_v50, 0.0 }
 0x20e   :  { %v1414_v52 = vpack.c.bf16 %v1132_v49, %v1120_v46 }
 0x20f   :  { %v1417_v53 = vpack.c.bf16 %v1133_v51, %v1121_v47 }
 0x210   :  { %1409 = vmatpush1.bf16.msra.mxu1 %v1408_v24 }
 0x211   :  { %1410 = vmatprep.subr.bf16.mxu1 %v1526_v54 }
 0x214   :  { %1412 = vmatpush1.bf16.msra.mxu1 %v1411_v25 }
 0x215   :  { %1413 = vmatprep.subr.bf16.mxu1 %v1526_v54 }
 0x218   :  { %1415 = vmatpush1.bf16.msra.mxu1 %v1414_v52 }
 0x219   :  { %1416 = vmatprep.subr.bf16.mxu1 %v1526_v54 }
 0x21c   :  { %1418 = vmatpush1.bf16.msra.mxu1 %v1417_v53 }
 0x21d   :  { %1188 = vmatprep.subr.mxu1 %v1523_v0 }
 0x220   :  { %1278 = vmatpush1.msk.msra.mxu1 %vm637_vm5, %v1525_v10 }
 0x221   :  { %1205 = vmatmul.mubr.f32.vlgmr.msra.gmra.mrb[8].mxu1 %v1134_v55 }
 0x2f4   :  { %v1206_v56 = vpop.f32.mrb[8].mxu1 }
 0x2f5   :  { %v1280_v57 = vmul.f32 -1.442695, %v1206_v56  ;;  %v1208_v58 = vpop.f32.mrb[9].mxu1 }
 0x2f7   :  { %1443 = vpow2.f32 %v1280_v57 }
 0x301   :  { %v1444_v59 = vpop.eup %1443 }
 0x302   :  { %v1213_v60 = vadd.f32 1.0, %v1444_v59 }
 0x304   :  { %1445 = vrcp.f32 %v1213_v60 }
 0x30e   :  { %v1446_v61 = vpop.eup %1445 }
 0x30f   :  { %1216 = vst [vmem:[#allocation7] sm:$0xff] %v1446_v61 }
 0x310   :  { %1502 = shalt.err (!%p1499_p6)
}
 0x311   :  { %s1503_s10 = scalar_lea.hbm %s1763_s2, 128 }
 0x312   :  { %p1504_p7 = scmp.ne.s32.totalorder %s1763_s2, %s1503_s10  ;;  %p1507_p8 = scmp.lt.u32.totalorder %s1503_s10, %s1763_s2 }
 0x314   :  { %p1509_p9 = pnand %p1507_p8, %p1504_p7 }
 0x316   :  { %1512 = shalt.err (!%p1509_p9)
}
 0x317   :  { %1226 = dma.vmem_to_hbm [thread:$0]  %s1224_s6, 128, %s1763_s2, [#allocation4]  }
 0x318   :  { %1517 = dma.done.wait [#allocation4], 128  }
 0x319   :  { %1518 = vsyncadd [#allocation4], 4294967168 }
 0x31a   :  { %1230 = vsyncpa [#allocation3], 1 }
 0x31b   :  { %1231 = vsyncpa [#allocation6], 1 }
 0x31c   :  { %1232 = vsyncpa [#allocation4], 1 }

</bundles_post_ra>
